<compile_context>
chip_gen: v7x
topology: tpu7x:2x2x1
jax: 0.10.0
libtpu: 0.0.40
codegen_flags: <defaults>
</compile_context>

<pallas_src>
import jax
import jax.numpy as jnp
from jax.experimental import pallas as pl
from jax.experimental.pallas import tpu as pltpu

_LANE = 128          # lane width; pad feature dims to multiples of this.
                     # (On v6e/v7x with large, compute-bound hidden dims, 256 feeds
                     #  the full MXU; for the tiny outdim=10 head 128 is right.)
_MAX_TILE_B = 512    # upper bound on batch tile (85%+ of HBM roofline measured)
_MIN_GRID_STEPS = 4  # >=2 steps per TensorCore on v7x megacore


def _round_up(x, m):
    return ((x + m - 1) // m) * m


def _mlp_kernel(x_ref, w1_ref, b1_ref, w2_ref, b2_ref, o_ref):
    # Fused hot path; all operands already resident in VMEM.
    x = x_ref[...]                                    # (tb, indim), native dtype
    h = jnp.dot(x, w1_ref[...],                       # MXU, f32 accumulate
                preferred_element_type=jnp.float32)
    h = h + b1_ref[...].astype(jnp.float32)           # (tb, hidden_p)
    h = jnp.maximum(h, 0.0)                           # ReLU
    h = h.astype(x.dtype)                             # keep MXU operands narrow
    y = jnp.dot(h, w2_ref[...],
                preferred_element_type=jnp.float32)
    y = y + b2_ref[...].astype(jnp.float32)           # (tb, out_p)
    o_ref[...] = y.astype(o_ref.dtype)


def pad_mlp_params(w1_t, b1, w2_t, b2, compute_dtype=None):
    """Zero-pad hidden/out feature dims to lane multiples ONCE at init
    (mathematically identity: padded h columns are ReLU(0+0)=0 and the matching
    padded w2 rows are 0). Optionally cast weights to a narrow MXU dtype
    (e.g. jnp.bfloat16) here so the per-call forward pays no extra HBM pass."""
    hidden = w1_t.shape[1]
    outdim = w2_t.shape[1]
    hidden_p = _round_up(hidden, _LANE)
    out_p = _round_up(outdim, _LANE)
    w1_p = jnp.pad(w1_t, ((0, 0), (0, hidden_p - hidden)))
    b1_p = jnp.pad(b1, ((0, 0), (0, hidden_p - hidden)))
    w2_p = jnp.pad(w2_t, ((0, hidden_p - hidden), (0, out_p - outdim)))
    b2_p = jnp.pad(b2, ((0, 0), (0, out_p - outdim)))
    if compute_dtype is not None:
        w1_p = w1_p.astype(compute_dtype)
        w2_p = w2_p.astype(compute_dtype)
    return w1_p, b1_p, w2_p, b2_p


def _pick_batch_tile(B, indim, hidden_p, out_p, itemsize):
    """Large tiles amortize per-step overhead; keep >= _MIN_GRID_STEPS so the
    'parallel' batch axis gives each v7x TC >= 2 steps to double-buffer; clamp
    so the per-step working set stays well inside VMEM."""
    tb = min(_MAX_TILE_B, _round_up(max(pl.cdiv(B, _MIN_GRID_STEPS), 1), 8))
    tb = min(max(tb, 8), _round_up(B, 8))

    def step_bytes(t):
        # x in + out (double-buffered) + f32 intermediates h and y
        return (2 * t * indim + 2 * t * out_p) * itemsize + t * (hidden_p + out_p) * 4

    while tb > 8 and step_bytes(tb) > (40 << 20):
        tb = _round_up(tb // 2, 8)
    return tb


def mlp_forward(x, w1_p, b1_p, w2_p, b2_p, outdim, out_dtype=None):
    """x: (B, indim); w1_p: (indim, hidden_p); b1_p: (1, hidden_p);
    w2_p: (hidden_p, out_p); b2_p: (1, out_p). Returns (B, outdim)."""
    # If params were cast to a narrow MXU dtype at init, cast x once here too.
    if x.dtype != w1_p.dtype:
        x = x.astype(w1_p.dtype)
    out_dtype = out_dtype if out_dtype is not None else x.dtype

    B, indim = x.shape
    hidden_p = w1_p.shape[1]
    out_p = w2_p.shape[1]
    itemsize = jnp.dtype(x.dtype).itemsize

    tb = _pick_batch_tile(B, indim, hidden_p, out_p, itemsize)
    # No jnp.pad of x: Pallas masks the partial last block's output writes, so a
    # non-tile-aligned B costs no extra HBM pass over x.
    grid = (pl.cdiv(B, tb),)

    # Grid-invariant operands (weights/biases) are never re-fetched; single-buffer
    # them when double-buffering would actually cost meaningful VMEM.
    weight_buf_bytes = (indim * hidden_p + hidden_p * out_p + hidden_p + out_p) * itemsize
    single_buffer_weights = weight_buf_bytes > (1 << 20)
    resident = {"pipeline_mode": pl.Buffered(1)} if single_buffer_weights else {}
    weight_bufs = 1 if single_buffer_weights else 2

    # VMEM budget derived from the actual tiles (+2x headroom), capped at 48 MiB
    # so it fits v7x's 64 MiB physical VMEM; floor at 16 MiB.
    step_bytes = (2 * tb * indim + 2 * tb * out_p) * itemsize + tb * (hidden_p + out_p) * 4
    vmem_need = weight_bufs * weight_buf_bytes + step_bytes
    vmem_limit = int(max(16 << 20, min(2 * vmem_need + (4 << 20), 48 << 20)))

    # NOTE: for production widths where the weights no longer fit resident
    # (e.g. bf16 4096x16384), add a hidden/K grid axis (last, "arbitrary") with an
    # f32 VMEM accumulator scratch, keeping the batch axis "parallel".
    out_padded = pl.pallas_call(
        _mlp_kernel,
        out_shape=jax.ShapeDtypeStruct((B, out_p), out_dtype),
        grid_spec=pl.GridSpec(
            grid=grid,
            in_specs=[
                pl.BlockSpec((tb, indim), lambda i: (i, 0)),                     # x tile
                pl.BlockSpec((indim, hidden_p), lambda i: (0, 0), **resident),   # w1 resident
                pl.BlockSpec((1, hidden_p), lambda i: (0, 0), **resident),       # b1 resident
                pl.BlockSpec((hidden_p, out_p), lambda i: (0, 0), **resident),   # w2 resident
                pl.BlockSpec((1, out_p), lambda i: (0, 0), **resident),          # b2 resident
            ],
            out_specs=pl.BlockSpec((tb, out_p), lambda i: (i, 0)),               # lane-dense
        ),
        compiler_params=pltpu.CompilerParams(
            dimension_semantics=("parallel",),   # v7x: shard batch over 2 TCs
            vmem_limit_bytes=vmem_limit,
        ),
    )(x, w1_p, b1_p, w2_p, b2_p)

    return out_padded[:, :outdim]


def init_mlp_params(key, indim, outdim=10, dtype=jnp.float32):
    """Deterministic init mimicking nn.Linear shapes:
    fc1: weight (indim//2, indim), bias (indim//2)
    out: weight (outdim, indim//2), bias (outdim)
    Returned pre-transposed (in, out) with (1, N) bias rows (unpadded)."""
    hidden = indim // 2
    k1, k2, k3, k4 = jax.random.split(key, 4)
    bound1 = 1.0 / jnp.sqrt(indim)
    bound2 = 1.0 / jnp.sqrt(hidden)
    w1 = jax.random.uniform(k1, (hidden, indim), dtype, -bound1, bound1)  # PyTorch (out, in)
    b1 = jax.random.uniform(k2, (hidden,), dtype, -bound1, bound1)
    w2 = jax.random.uniform(k3, (outdim, hidden), dtype, -bound2, bound2)
    b2 = jax.random.uniform(k4, (outdim,), dtype, -bound2, bound2)
    return w1.T, b1.reshape(1, hidden), w2.T, b2.reshape(1, outdim)


if __name__ == "__main__":
    # Small but non-trivial: B=256 gives a 4-step batch grid (tb=64), exercising
    # the pipelined "parallel" batch axis.
    B, indim, outdim = 256, 64, 10

    key = jax.random.PRNGKey(0)
    kx, kp = jax.random.split(key)
    x = jax.random.normal(kx, (B, indim), jnp.float32)
    w1_t, b1, w2_t, b2 = init_mlp_params(kp, indim, outdim)

    # Padding (and optional bf16 cast) happens once, outside the forward path.
    w1_p, b1_p, w2_p, b2_p = pad_mlp_params(w1_t, b1, w2_t, b2)

    y = mlp_forward(x, w1_p, b1_p, w2_p, b2_p, outdim)
    y = jax.block_until_ready(y)

    # Reference check in plain JAX (same math as the PyTorch forward).
    y_ref = jnp.maximum(x @ w1_t + b1, 0.0) @ w2_t + b2
    assert y.shape == (B, outdim)
    assert jnp.allclose(y, y_ref, atol=1e-5, rtol=1e-5)

    # TODO(synk): infer_latent (fc1-only path) is not exposed as a separate kernel.
    print("KERNEL_OK")
</pallas_src>

<mosaic_0001>
module attributes {stable_mosaic.version = 11 : i64} {
  func.func @_mlp_kernel(%arg0: i32, %arg1: memref<64x64xf32, #tpu.memory_space<vmem>>, %arg2: memref<64x128xf32, #tpu.memory_space<vmem>>, %arg3: memref<1x128xf32, #tpu.memory_space<vmem>>, %arg4: memref<128x128xf32, #tpu.memory_space<vmem>>, %arg5: memref<1x128xf32, #tpu.memory_space<vmem>>, %arg6: memref<64x128xf32, #tpu.memory_space<vmem>>) attributes {dimension_semantics = [#tpu.dimension_semantics<parallel>], iteration_bounds = array<i64: 4>, scalar_prefetch = 0 : i64, scratch_operands = 0 : i64, tpu.core_type = #tpu.core_type<tc>, window_params = [{transform_indices = @transform_0, window_bounds = array<i64: 64, 64>}, {pipeline_mode = #tpu.pipeline_mode<synchronous>, transform_indices = @transform_1, window_bounds = array<i64: 64, 128>}, {pipeline_mode = #tpu.pipeline_mode<synchronous>, transform_indices = @transform_2, window_bounds = array<i64: 1, 128>}, {pipeline_mode = #tpu.pipeline_mode<synchronous>, transform_indices = @transform_3, window_bounds = array<i64: 128, 128>}, {pipeline_mode = #tpu.pipeline_mode<synchronous>, transform_indices = @transform_4, window_bounds = array<i64: 1, 128>}, {transform_indices = @transform_5, window_bounds = array<i64: 64, 128>}]} {
    %c0 = arith.constant 0 : index
    %c0_0 = arith.constant 0 : index
    %0 = vector.load %arg1[%c0, %c0_0] : memref<64x64xf32, #tpu.memory_space<vmem>>, vector<64x64xf32>
    %c0_1 = arith.constant 0 : index
    %c0_2 = arith.constant 0 : index
    %1 = vector.load %arg2[%c0_1, %c0_2] : memref<64x128xf32, #tpu.memory_space<vmem>>, vector<64x128xf32>
    %cst = arith.constant dense<0.000000e+00> : vector<64x128xf32>
    %2 = tpu.matmul %0, %1, %cst {dimension_numbers = #tpu.dot_dimension_numbers<[1], [0], [0], [1], [0, 0, 1, 1], [], []>} : vector<64x64xf32>, vector<64x128xf32>, vector<64x128xf32> -> vector<64x128xf32>
    %c0_3 = arith.constant 0 : index
    %c0_4 = arith.constant 0 : index
    %3 = vector.load %arg3[%c0_3, %c0_4] : memref<1x128xf32, #tpu.memory_space<vmem>>, vector<1x128xf32>
    %4 = vector.broadcast %3 : vector<1x128xf32> to vector<64x128xf32>
    %5 = arith.addf %2, %4 : vector<64x128xf32>
    %cst_5 = arith.constant 0.000000e+00 : f32
    %6 = vector.broadcast %cst_5 : f32 to vector<64x128xf32>
    %7 = arith.maximumf %5, %6 : vector<64x128xf32>
    %c0_6 = arith.constant 0 : index
    %c0_7 = arith.constant 0 : index
    %8 = vector.load %arg4[%c0_6, %c0_7] : memref<128x128xf32, #tpu.memory_space<vmem>>, vector<128x128xf32>
    %cst_8 = arith.constant dense<0.000000e+00> : vector<64x128xf32>
    %9 = tpu.matmul %7, %8, %cst_8 {dimension_numbers = #tpu.dot_dimension_numbers<[1], [0], [0], [1], [0, 0, 1, 1], [], []>} : vector<64x128xf32>, vector<128x128xf32>, vector<64x128xf32> -> vector<64x128xf32>
    %c0_9 = arith.constant 0 : index
    %c0_10 = arith.constant 0 : index
    %10 = vector.load %arg5[%c0_9, %c0_10] : memref<1x128xf32, #tpu.memory_space<vmem>>, vector<1x128xf32>
    %11 = vector.broadcast %10 : vector<1x128xf32> to vector<64x128xf32>
    %12 = arith.addf %9, %11 : vector<64x128xf32>
    %c0_11 = arith.constant 0 : index
    %c0_12 = arith.constant 0 : index
    %13 = vector.load %arg6[%c0_11, %c0_12] : memref<64x128xf32, #tpu.memory_space<vmem>>, vector<64x128xf32>
    tpu.vector_store %arg6[%c0_11, %c0_12], %12 {strides = array<i32>} : memref<64x128xf32, #tpu.memory_space<vmem>>, vector<64x128xf32>,
    return
  }
  func.func @transform_0(%arg0: i32) -> (i32, i32) {
    %c0_i32 = arith.constant 0 : i32
    %c0_i32_0 = arith.constant 0 : i32
    return %arg0, %c0_i32 : i32, i32
  }
  func.func @transform_1(%arg0: i32) -> (i32, i32) {
    %c0_i32 = arith.constant 0 : i32
    %c0_i32_0 = arith.constant 0 : i32
    %c0_i32_1 = arith.constant 0 : i32
    return %c0_i32, %c0_i32_0 : i32, i32
  }
  func.func @transform_2(%arg0: i32) -> (i32, i32) {
    %c0_i32 = arith.constant 0 : i32
    %c0_i32_0 = arith.constant 0 : i32
    %c0_i32_1 = arith.constant 0 : i32
    return %c0_i32, %c0_i32_0 : i32, i32
  }
  func.func @transform_3(%arg0: i32) -> (i32, i32) {
    %c0_i32 = arith.constant 0 : i32
    %c0_i32_0 = arith.constant 0 : i32
    %c0_i32_1 = arith.constant 0 : i32
    return %c0_i32, %c0_i32_0 : i32, i32
  }
  func.func @transform_4(%arg0: i32) -> (i32, i32) {
    %c0_i32 = arith.constant 0 : i32
    %c0_i32_0 = arith.constant 0 : i32
    %c0_i32_1 = arith.constant 0 : i32
    return %c0_i32, %c0_i32_0 : i32, i32
  }
  func.func @transform_5(%arg0: i32) -> (i32, i32) {
    %c0_i32 = arith.constant 0 : i32
    %c0_i32_0 = arith.constant 0 : i32
    return %arg0, %c0_i32 : i32, i32
  }
}

</mosaic_0001>

<bundles_post_ra>
// kernel: tpu_custom_call.1
= control target key start
LH: loop header
LB: loop body
LE: loop exit
PB: predicated region body
PF: predicated region fallthrough
CT: control target
= control target key end

     0   :  { %10 = vsyncpa [#allocation3], 0  ;;  %s1122_s0 = inlined_call_operand.vmem [shape: f32[256,64], index: 0, kind: input, shape index: {}]   ;;  %s1123_s1 = inlined_call_operand.vmem [shape: f32[64,128], index: 1, kind: input, shape index: {}]   ;;  %s1124_s2 = inlined_call_operand.vmem [shape: f32[1,128], index: 2, kind: input, shape index: {}]   ;;  %s1125_s3 = inlined_call_operand.vmem [shape: f32[128,128], index: 3, kind: input, shape index: {}]   ;;  %s1126_s4 = inlined_call_operand.vmem [shape: f32[1,128], index: 4, kind: input, shape index: {}]   ;;  %s1127_s5 = inlined_call_operand.hbm [shape: f32[256,128], index: 5, kind: output, shape index: {}]  }
   0x1   :  { %12 = vsyncpa [#allocation3 + $0x1], 0  ;;  %s920_s18 = smov 0   ;;  %s922_s19 = smov 0  }
   0x2   :  { %s924_s20 = smov 0   ;;  %s926_s21 = smov 0  }
   0x3 LB: > { %s941_s22 = sadd.s32 4294967295, %s885_s21   ;;  %s599_s23 = sadd.s32 4294967294, %s885_s21   ;;  %s885_s21 = sphi %s926_s21, %s1133_s21   ;;  %s881_s20 = sphi %s924_s20, %s1132_s20   ;;  %s877_s19 = sphi %s922_s19, %s1131_s19   ;;  %s873_s18 = sphi %s920_s18, %s1130_s18  }
   0x4   : > { %s945_s24 = sadd.s32 1, %s885_s21   ;;  %s135_s25 = sadd.s32 1, %s881_s20 }
   0x5   : > { %s132_s26 = ssub.s32 %s885_s21, %s945_s24  ;;  %p145_p0 = scmp.ne.s32.totalorder %s881_s20, %s877_s19 }
   0x6   : > { %p133_p1 = scmp.eq.s32.totalorder %s132_s26, 0  ;;  %p146_p2 = scmp.eq.s32.totalorder %s941_s22, 3 }
   0x7   : > { %p151_p3 = scmp.ne.s32.totalorder %s877_s19, %s873_s18  ;;  %p152_p4 = scmp.eq.s32.totalorder %s599_s23, 3 }
   0x8   : > { %s956_s27 = scalar_select %p133_p1, %s881_s20, %s135_s25  }
   0x9   : > { %p958_p5 = por %p146_p2, %p145_p0  ;;  %p962_p6 = por %p152_p4, %p151_p3 }
   0xa   : > { %p602_p7 = scmp.ge.s32.totalorder %s885_s21, 1  ;;  %p191_p8 = scmp.lt.s32.totalorder %s885_s21, 5 }
   0xc   : > { %p192_p9 = pnand %p602_p7, %p191_p8 }
   0xd   : > { %v234_v0 = vld [vmem:[%s1123_s1] sm:$0xff] (!%p192_p9)  ;;  %v235_v1 = vld [vmem:[%s1123_s1 + $0x8] sm:$0xff] (!%p192_p9)  ;;  %v236_v2 = vld [vmem:[%s1123_s1 + $0x10] sm:$0xff] (!%p192_p9)  ;;  %s604_s11 = sshll.u32 (!%p192_p9), %s941_s22, 3  ;;  %vm249_vm0 = vcmask (!%p192_p9), 523264   ;;  %s621_s23 = sshll.u32 (!%p192_p9), %s941_s22, 10 }
   0xe   : > { %195 = sbr.rel (%p192_p9) target bundleno = 492 (0x1ec), region = 40  ;;  %v734_v3 = vpack.c.bf16 (!%p192_p9), %v235_v1, %v234_v0  ;;  %v237_v4 = vld [vmem:[%s1123_s1 + $0x18] sm:$0xff] (!%p192_p9)  ;;  %p220_p10 = scmp.lt.s32.totalorder (!%p192_p9), %s604_s11, 31  ;;  %v238_v6 = vld [vmem:[%s1123_s1 + $0x20] sm:$0xff] (!%p192_p9)  ;;  %v239_v7 = vld [vmem:[%s1123_s1 + $0x28] sm:$0xff] (!%p192_p9) }
   0xf   : > { %v738_v5 = vpack.c.bf16 (!%p192_p9), %v237_v4, %v236_v2  ;;  %v387_v8 = vld [vmem:[%s1125_s3] sm:$0xff] (!%p192_p9)  ;;  %v388_v9 = vld [vmem:[%s1125_s3 + $0x8] sm:$0xff] (!%p192_p9)  ;;  %v389_v10 = vld [vmem:[%s1125_s3 + $0x10] sm:$0xff] (!%p192_p9)  ;;  %v742_v13 = vpack.c.bf16 (!%p192_p9), %v239_v7, %v238_v6  ;;  %s1075_s6 = scalar_lea.hbm (!%p192_p9), %s1127_s5, %s621_s23  ;;  %s887_s8 = smov (!%p192_p9), [#allocation2]  }
  0x10   : > { %735 = vmatprep.subr.bf16.mxu0 (!%p192_p9), %v734_v3  ;;  %v390_v11 = vld [vmem:[%s1125_s3 + $0x18] sm:$0xff] (!%p192_p9)  ;;  %v750_v12 = vpack.c.bf16 (!%p192_p9), %v388_v9, %v387_v8  ;;  %v391_v15 = vld [vmem:[%s1125_s3 + $0x20] sm:$0xff] (!%p192_p9)  ;;  %v392_v16 = vld [vmem:[%s1125_s3 + $0x28] sm:$0xff] (!%p192_p9)  ;;  %s827_s9 = sshll.u32 (!%p192_p9), %s887_s8, 4  ;;  %s828_s9 = int_to_ptr.vmem [resolvable:$false] %s827_s9 }
  0x11   : > { %737 = vmatpush3.bf16.msra.mxu0 (!%p192_p9), %v734_v3  ;;  %v754_v14 = vpack.c.bf16 (!%p192_p9), %v390_v11, %v389_v10  ;;  %v240_v17 = vld [vmem:[%s1123_s1 + $0x30] sm:$0xff] (!%p192_p9)  ;;  %v241_v18 = vld [vmem:[%s1123_s1 + $0x38] sm:$0xff] (!%p192_p9)  ;;  %v758_v20 = vpack.c.bf16 (!%p192_p9), %v392_v16, %v391_v15  ;;  %v395_v25 = vld [vmem:[%s1125_s3 + $0x40] sm:$0xff] (!%p192_p9) }
  0x12   : > { %739 = vmatprep.subr.bf16.mxu0 (!%p192_p9), %v738_v5  ;;  %751 = vmatprep.subr.bf16.mxu1 (!%p192_p9), %v750_v12  ;;  %v746_v21 = vpack.c.bf16 (!%p192_p9), %v241_v18, %v240_v17  ;;  %v393_v22 = vld [vmem:[%s1125_s3 + $0x30] sm:$0xff] (!%p192_p9)  ;;  %v394_v23 = vld [vmem:[%s1125_s3 + $0x38] sm:$0xff] (!%p192_p9)  ;;  %v396_v26 = vld [vmem:[%s1125_s3 + $0x48] sm:$0xff] (!%p192_p9) }
  0x13   : > { %753 = vmatpush3.bf16.msra.mxu1 (!%p192_p9), %v750_v12  ;;  %v762_v24 = vpack.c.bf16 (!%p192_p9), %v394_v23, %v393_v22  ;;  %v766_v28 = vpack.c.bf16 (!%p192_p9), %v396_v26, %v395_v25  ;;  %v397_v30 = vld [vmem:[%s1125_s3 + $0x50] sm:$0xff] (!%p192_p9)  ;;  %v398_v31 = vld [vmem:[%s1125_s3 + $0x58] sm:$0xff] (!%p192_p9)  ;;  %v399_v35 = vld [vmem:[%s1125_s3 + $0x60] sm:$0xff] (!%p192_p9) }
  0x14   : > { %755 = vmatprep.subr.bf16.mxu1 (!%p192_p9), %v754_v14  ;;  %v770_v33 = vpack.c.bf16 (!%p192_p9), %v398_v31, %v397_v30  ;;  %v400_v36 = vld [vmem:[%s1125_s3 + $0x68] sm:$0xff] (!%p192_p9)  ;;  %v401_v41 = vld [vmem:[%s1125_s3 + $0x70] sm:$0xff] (!%p192_p9)  ;;  %v402_v42 = vld [vmem:[%s1125_s3 + $0x78] sm:$0xff] (!%p192_p9) }
  0x15   : > { %s1135_s11 = smov (!%p220_p10, %s604_s11), 31  ;;  %741 = vmatpush3.bf16.msra.mxu0 %v738_v5  ;;  %v774_v38 = vpack.c.bf16 %v400_v36, %v399_v35  ;;  %v778_v43 = vpack.c.bf16 %v402_v42, %v401_v41  ;;  %v606_v44 = vld [vmem:[%s1124_s2] ss:$0 sm:$0xff] }
  0x16   : > { %s605_s10 = sshll.u32 %s1135_s11, 3  ;;  %743 = vmatprep.subr.bf16.mxu0 %v742_v13  ;;  %v615_v5 = vld [vmem:[%s1126_s4] ss:$0 sm:$0xff] }
  0x17   : > { %s1014_s30 = scalar_lea.vmem %s1122_s0, %s605_s10  ;;  %757 = vmatpush3.bf16.msra.mxu1 %v754_v14  ;;  %s829_s10 = scalar_lea.vmem %s828_s9, 2048 }
  0x18   : > { %v226_v19 = vld [vmem:[%s1014_s30] sm:$0xff]  ;;  %759 = vmatprep.subr.bf16.mxu1 %v758_v20  ;;  %v227_v27 = vld [vmem:[%s1014_s30 + $0x8] sm:$0xff]  ;;  %v228_v29 = vld [vmem:[%s1014_s30 + $0x10] sm:$0xff] }
  0x19   : > { %678 = vmatprep.mubr.msk.f32.mxu0 %vm249_vm0, %v226_v19  ;;  %745 = vmatpush3.bf16.msra.mxu0 %v742_v13  ;;  %v229_v32 = vld [vmem:[%s1014_s30 + $0x18] sm:$0xff]  ;;  %v230_v34 = vld [vmem:[%s1014_s30 + $0x20] sm:$0xff]  ;;  %v231_v37 = vld [vmem:[%s1014_s30 + $0x28] sm:$0xff] }
  0x1a   : > { %747 = vmatprep.subr.bf16.mxu0 %v746_v21  ;;  %v232_v39 = vld [vmem:[%s1014_s30 + $0x30] sm:$0xff]  ;;  %v233_v40 = vld [vmem:[%s1014_s30 + $0x38] sm:$0xff]  ;;  %s216_s30 = sand.u32 1, %s877_s19  }
  0x1b   : > { %761 = vmatpush3.bf16.msra.mxu1 %v758_v20  ;;  %s603_s14 = sshll.u32 %s216_s30, 6  ;;  %s1081_s22 = scalar_lea.sflag [#allocation3], %s216_s30 }
  0x1c   : > { %763 = vmatprep.subr.bf16.mxu1 %v762_v24  ;;  %s218_s17 = scalar_lea.vmem [#allocation2], %s603_s14 }
  0x1d   : > { %749 = vmatpush3.bf16.msra.mxu0 %v746_v21  ;;  %s537_s25 = sshll.u32 %s218_s17, 4  ;;  %s1077_s25 = int_to_ptr.vmem [resolvable:$true] %s537_s25 }
  0x1e   : > { %s823_s7 = scalar_lea.vmem %s1077_s25, 1024  ;;  %p830_p0 = scmp.lt.s32.totalorder %s1077_s25, %s828_s9 }
  0x1f   : > { %765 = vmatpush3.bf16.msra.mxu1 %v762_v24  ;;  %p824_p11 = scmp.ne.s32.totalorder %s1077_s25, %s823_s7  ;;  %p831_p1 = scmp.lt.s32.totalorder %s829_s10, %s823_s7 }
  0x20   : > { %679 = vmatmul.mubr.msk.f32.vlgmr.msra.gmra.mrb[0].mxu0 %vm249_vm0, %v227_v27  ;;  %767 = vmatprep.subr.bf16.mxu1 %v766_v28 }
  0x21   : > { %681 = vmatprep.mubr.msk.f32.mxu0 %vm249_vm0, %v228_v29  ;;  %p825_p12 = pnand %p824_p11, %p958_p5  ;;  %p832_p2 = por %p831_p1, %p830_p0 }
  0x23   : > { %769 = vmatpush3.bf16.msra.mxu1 %v766_v28  ;;  %p826_p13 = pneg %p825_p12 }
  0x24   : > { %682 = vmatmul.mubr.msk.f32.gmra.mrb[2].mxu0 %vm249_vm0, %v229_v32  ;;  %771 = vmatprep.subr.bf16.mxu1 %v770_v33 }
  0x25   : > { %684 = vmatprep.mubr.msk.f32.mxu0 %vm249_vm0, %v230_v34  ;;  %p833_p3 = pnand %p832_p2, %p826_p13 }
  0x27   : > { %773 = vmatpush3.bf16.msra.mxu1 %v770_v33 }
  0x28   : > { %685 = vmatmul.mubr.msk.f32.gmra.mrb[4].mxu0 %vm249_vm0, %v231_v37  ;;  %775 = vmatprep.subr.bf16.mxu1 %v774_v38 }
  0x29   : > { %687 = vmatprep.mubr.msk.f32.mxu0 %vm249_vm0, %v232_v39 }
  0x2b   : > { %777 = vmatpush3.bf16.msra.mxu1 %v774_v38 }
  0x2c   : > { %688 = vmatmul.mubr.msk.f32.gmra.mrb[6].mxu0 %vm249_vm0, %v233_v40  ;;  %779 = vmatprep.subr.bf16.mxu1 %v778_v43 }
  0x2f   : > { %781 = vmatpush3.bf16.msra.mxu1 %v778_v43 }
  0xf3   : > { %v680_v45 = vpop.f32.mrb[0].mxu0 }
  0xf4   : > { %v346_v46 = vadd.f32 %v680_v45, %v606_v44  ;;  %v340_v47 = vpop.f32.mrb[1].mxu0 }
  0xf5   : > { %v341_v48 = vadd.f32 %v606_v44, %v340_v47 }
  0xf6   : > { %v380_v51 = vmax.f32 %v346_v46, 0.0 }
  0xf7   : > { %v683_v49 = vpop.f32.mrb[2].mxu0  ;;  %v379_v50 = vmax.f32 %v341_v48, 0.0 }
  0xf8   : > { %v356_v52 = vadd.f32 %v683_v49, %v606_v44  ;;  %v350_v53 = vpop.f32.mrb[3].mxu0 }
  0xf9   : > { %v351_v54 = vadd.f32 %v606_v44, %v350_v53  ;;  %722 = vmatprep.mubr.f32.mxu1 %v379_v50 }
  0xfa   : > { %723 = vmatmul.mubr.f32.vlgmr.msra.gmra.mrb[0].mxu1 %v380_v51  ;;  %v382_v57 = vmax.f32 %v356_v52, 0.0 }
  0xfb   : > { %v381_v55 = vmax.f32 %v351_v54, 0.0  ;;  %v686_v56 = vpop.f32.mrb[4].mxu0 }
  0xfc   : > { %v366_v58 = vadd.f32 %v686_v56, %v606_v44  ;;  %v360_v59 = vpop.f32.mrb[5].mxu0 }
  0xfd   : > { %v361_v60 = vadd.f32 %v606_v44, %v360_v59  ;;  %725 = vmatprep.mubr.f32.mxu1 %v381_v55 }
  0xfe   : > { %726 = vmatmul.mubr.f32.gmra.mrb[2].mxu1 %v382_v57  ;;  %v384_v63 = vmax.f32 %v366_v58, 0.0 }
  0xff   : > { %v383_v61 = vmax.f32 %v361_v60, 0.0  ;;  %v689_v62 = vpop.f32.mrb[6].mxu0 }
 0x100   : > { %v376_v0 = vadd.f32 %v689_v62, %v606_v44  ;;  %v370_v1 = vpop.f32.mrb[7].mxu0 }
 0x101   : > { %v371_v2 = vadd.f32 %v606_v44, %v370_v1  ;;  %728 = vmatprep.mubr.f32.mxu1 %v383_v61 }
 0x102   : > { %729 = vmatmul.mubr.f32.gmra.mrb[4].mxu1 %v384_v63  ;;  %v386_v4 = vmax.f32 %v376_v0, 0.0 }
 0x103   : > { %v385_v3 = vmax.f32 %v371_v2, 0.0 }
 0x105   : > { %731 = vmatprep.mubr.f32.mxu1 %v385_v3 }
 0x106   : > { %732 = vmatmul.mubr.f32.gmra.mrb[6].mxu1 %v386_v4 }
 0x1cd   : > { %v724_v6 = vpop.f32.mrb[0].mxu1 }
 0x1ce   : > { %v482_v7 = vadd.f32 %v724_v6, %v615_v5  ;;  %v476_v8 = vpop.f32.mrb[1].mxu1 }
 0x1cf   : > { %v477_v9 = vadd.f32 %v615_v5, %v476_v8 }
 0x1d0   : > { %516 = vst [vmem:[%s218_s17 + $0x8] sm:$0xff] %v482_v7 }
 0x1d1   : > { %515 = vst [vmem:[%s218_s17] sm:$0xff] %v477_v9  ;;  %v727_v10 = vpop.f32.mrb[2].mxu1 }
 0x1d2   : > { %v492_v11 = vadd.f32 %v727_v10, %v615_v5  ;;  %v486_v12 = vpop.f32.mrb[3].mxu1 }
 0x1d3   : > { %v487_v13 = vadd.f32 %v615_v5, %v486_v12 }
 0x1d4   : > { %518 = vst [vmem:[%s218_s17 + $0x18] sm:$0xff] %v492_v11 }
 0x1d5   : > { %517 = vst [vmem:[%s218_s17 + $0x10] sm:$0xff] %v487_v13  ;;  %v730_v14 = vpop.f32.mrb[4].mxu1 }
 0x1d6   : > { %v502_v15 = vadd.f32 %v730_v14, %v615_v5  ;;  %v496_v16 = vpop.f32.mrb[5].mxu1 }
 0x1d7   : > { %v497_v17 = vadd.f32 %v615_v5, %v496_v16 }
 0x1d8   : > { %520 = vst [vmem:[%s218_s17 + $0x28] sm:$0xff] %v502_v15 }
 0x1d9   : > { %519 = vst [vmem:[%s218_s17 + $0x20] sm:$0xff] %v497_v17  ;;  %v733_v18 = vpop.f32.mrb[6].mxu1 }
 0x1da   : > { %v512_v19 = vadd.f32 %v733_v18, %v615_v5  ;;  %v506_v20 = vpop.f32.mrb[7].mxu1 }
 0x1db   : > { %v507_v21 = vadd.f32 %v615_v5, %v506_v20 }
 0x1dc   : > { %522 = vst [vmem:[%s218_s17 + $0x38] sm:$0xff] %v512_v19 }
 0x1dd   : > { %521 = vst [vmem:[%s218_s17 + $0x30] sm:$0xff] %v507_v21 }
 0x1de   : > { %836 = shalt.err (!%p833_p3)
}
 0x1df   : > { %s837_s12 = scalar_lea.hbm %s1075_s6, 1024  ;;  %s841_s14 = scalar_lea.hbm %s1127_s5, 4096 }
 0x1e0   : > { %p838_p4 = scmp.ne.s32.totalorder %s1075_s6, %s837_s12  ;;  %p842_p9 = scmp.lt.u32.totalorder %s1075_s6, %s1127_s5 }
 0x1e1   : > { %p843_p10 = scmp.lt.u32.totalorder %s841_s14, %s837_s12  ;;  %p845_p12 = scmp.lt.u32.totalorder %s837_s12, %s1075_s6 }
 0x1e2   : > { %p839_p7 = pnand %p838_p4, %p958_p5 }
 0x1e3   : > { %p844_p11 = por %p843_p10, %p842_p9 }
 0x1e4   : > { %p840_p8 = pneg %p839_p7 }
 0x1e5   : > { %p846_p13 = por %p845_p12, %p844_p11 }
 0x1e7   : > { %p847_p0 = pnand %p846_p13, %p840_p8 }
 0x1e9   : > { %850 = shalt.err (!%p847_p0)
}
 0x1ea   : > { %s888_s17 = smov 128   ;;  %s889_s23 = smov 8  }
 0x1eb   : > { %782 = dma.vmem_to_hbm [thread:$0]  (%p958_p5), %s1077_s25, 1024, %s1075_s6, %s1081_s22, %s888_s17, %s888_s17, %s889_s23  }
 0x1ec PF: > { %p788_p1 = scmp.ge.s32.totalorder %s885_s21, 2  ;;  %s552_s26 = sand.u32 1, %s873_s18  }
 0x1ed   : > { %s553_s11 = scalar_lea.sflag [#allocation3], %s552_s26 }
 0x1ee   : > { %p785_p2 = pnand %p788_p1, %p962_p6 }
 0x1f0   : > { %868 = dma.done.wait (!%p785_p2), %s553_s11, 1024  }
 0x1f1   : > { %870 = vsyncadd (!%p785_p2), %s553_s11, 4294966272  ;;  %p15_p3 = scmp.ge.s32.totalorder %s945_s24, 6   ;;  %s1130_s18 = smov %s877_s19 }
 0x1f2   : > { %s1131_s19 = smov %s881_s20  ;;  %s1132_s20 = smov %s956_s27 }
 0x1f3   : > { %s1133_s21 = smov %s945_s24  ;;  %17 = sbr.rel (!%p15_p3) target bundleno = 3 (0x3), region = 75 }
 0x1fa   :  { %558 = vsyncpa [#allocation3], 1 }
 0x1fb   :  { %560 = vsyncpa [#allocation3 + $0x1], 1 }

</bundles_post_ra>
